<compile_context>
chip_gen: v5e
topology: v5e:2x2
jax: 0.10.0
libtpu: 0.0.40
codegen_flags: <defaults>
</compile_context>

<pallas_src>
import numpy as np
import jax
import jax.numpy as jnp
from jax.experimental import pallas as pl
from jax.experimental.pallas import tpu as pltpu


# ---------------------------------------------------------------------------
# Parameter construction (mirrors MMILayerMatrix_Even.__init__), but only the
# per-MMI tau / kappa coefficient vectors are materialized -- never the dense
# (N, N) matrix.
# ---------------------------------------------------------------------------
def build_mmi_coefficients(n_inputs, mmi_i_losses=None, mmi_imbalances=None):
    """Returns (tau_tf, kappa_tf) float32 vectors of length n_inputs // 2.

    tau_tf[i]   = sqrt(loss_i) * sqrt(tau_i)            (real diagonal entry)
    kappa_tf[i] = sqrt(loss_i) * sqrt(kappa_i)           (magnitude of j*kappa)
    """
    if n_inputs % 2 == 1:
        raise Exception("n_inputs is odd!!! NONONO, put it even!!!")
    n_mmi = n_inputs // 2
    if mmi_i_losses is None or mmi_imbalances is None:
        i_loss = jnp.ones((n_mmi,), dtype=jnp.float32)
        tau = 0.5 * i_loss
        kappa = tau
    else:
        i_loss = mmi_i_losses.astype(jnp.float32)
        imb = mmi_imbalances.astype(jnp.float32)
        alpha = 0.5 * (imb - 1.0) / (imb + 1.0)
        tau = 0.5 + alpha
        kappa = 0.5 - alpha

    tau_tf = jnp.sqrt(i_loss) * jnp.sqrt(tau)
    kappa_tf = jnp.sqrt(i_loss) * jnp.sqrt(kappa)
    return tau_tf.astype(jnp.float32), kappa_tf.astype(jnp.float32)


def build_mmi_dense_reference(n_inputs, tau_tf, kappa_tf):
    """Dense complex M for reference checking only (not used by the kernel)."""
    t = np.asarray(tau_tf)
    k = np.asarray(kappa_tf)
    m = np.zeros((n_inputs, n_inputs), dtype=np.complex64)
    for i in range(n_inputs // 2):
        m[2 * i, 2 * i] = t[i]
        m[2 * i + 1, 2 * i + 1] = t[i]
        m[2 * i, 2 * i + 1] = 1j * k[i]
        m[2 * i + 1, 2 * i] = 1j * k[i]
    return jnp.asarray(m)


# ---------------------------------------------------------------------------
# Pallas kernel: block-diagonal complex apply, pure VPU elementwise work.
# The even/odd de-interleave is handled by the BlockSpec index_maps (DMA), so
# the kernel sees dense (bp, bc) tiles of port-0 and port-1 data.
# ---------------------------------------------------------------------------
def _mmi_even_kernel(tau_ref, kap_ref, x0r_ref, x0i_ref, x1r_ref, x1i_ref,
                     or_ref, oi_ref):
    p = pl.program_id(2)          # 0 -> even output ports, 1 -> odd output ports
    tau = tau_ref[...]            # (bp, 1), broadcasts along lanes
    kap = kap_ref[...]            # (bp, 1)

    @pl.when(p == 0)
    def _():
        # out[2i] = tau*x[2i] + j*kappa*x[2i+1]
        or_ref[...] = tau * x0r_ref[...] - kap * x1i_ref[...]
        oi_ref[...] = tau * x0i_ref[...] + kap * x1r_ref[...]

    @pl.when(p == 1)
    def _():
        # out[2i+1] = j*kappa*x[2i] + tau*x[2i+1]
        or_ref[...] = tau * x1r_ref[...] - kap * x0i_ref[...]
        oi_ref[...] = tau * x1i_ref[...] + kap * x0r_ref[...]


def _round_up(x, m):
    return ((x + m - 1) // m) * m


def mmi_layer_matrix_even_forward(tau_tf, kappa_tf, x_real, x_imag,
                                  *, max_block_pairs=256, max_block_cols=512):
    """out = M @ X (complex) using the block-diagonal structure of M.

    tau_tf/kappa_tf:  (N//2,) float32 per-MMI transfer coefficients
    x_real/x_imag:    (N, M)  float32
    returns (out_real, out_imag): (N, M) float32
    """
    n, m = x_real.shape
    if n % 2 != 0:
        raise Exception("n_inputs is odd!!! NONONO, put it even!!!")
    n_pairs = n // 2

    # Pair-tile rows: multiple of 8 (sublane).  Column tiles: multiple of 128
    # (lane-dense, unmasked vector stores).
    bp = min(max_block_pairs, _round_up(n_pairs, 8))
    bc = min(max_block_cols, _round_up(m, 128))
    pp = _round_up(n_pairs, bp)        # padded number of port pairs
    pmc = _round_up(m, bc)             # padded number of columns
    ncb = pmc // bc                    # column blocks per port

    xr = jnp.pad(x_real.astype(jnp.float32), ((0, 2 * pp - n), (0, pmc - m)))
    xi = jnp.pad(x_imag.astype(jnp.float32), ((0, 2 * pp - n), (0, pmc - m)))
    # Fused even/odd view: row i = [x[2i, :], x[2i+1, :]]  (free row-major
    # reinterpretation).  Port 0 occupies columns [0, pmc), port 1 [pmc, 2*pmc).
    xr_f = xr.reshape(pp, 2 * pmc)
    xi_f = xi.reshape(pp, 2 * pmc)

    tau_col = jnp.pad(tau_tf.astype(jnp.float32), (0, pp - n_pairs))[:, None]
    kap_col = jnp.pad(kappa_tf.astype(jnp.float32), (0, pp - n_pairs))[:, None]

    coef_spec = pl.BlockSpec((bp, 1), lambda i, j, p: (i, 0))
    x0_spec = pl.BlockSpec((bp, bc), lambda i, j, p: (i, j))          # even ports
    x1_spec = pl.BlockSpec((bp, bc), lambda i, j, p: (i, ncb + j))    # odd ports
    out_spec = pl.BlockSpec((bp, bc), lambda i, j, p: (i, p * ncb + j))

    out_r_f, out_i_f = pl.pallas_call(
        _mmi_even_kernel,
        out_shape=(
            jax.ShapeDtypeStruct((pp, 2 * pmc), jnp.float32),
            jax.ShapeDtypeStruct((pp, 2 * pmc), jnp.float32),
        ),
        grid=(pp // bp, ncb, 2),
        in_specs=[coef_spec, coef_spec, x0_spec, x0_spec, x1_spec, x1_spec],
        out_specs=(out_spec, out_spec),
        compiler_params=pltpu.CompilerParams(
            dimension_semantics=("parallel", "parallel", "arbitrary"),
        ),
    )(tau_col, kap_col, xr_f, xi_f, xr_f, xi_f)

    # Un-fuse the even/odd columns back into interleaved rows (free reshape),
    # then strip padding.
    out_r = out_r_f.reshape(2 * pp, pmc)[:n, :m]
    out_i = out_i_f.reshape(2 * pp, pmc)[:n, :m]
    return out_r, out_i


if __name__ == "__main__":
    key = jax.random.PRNGKey(0)
    k1, k2, k3, k4 = jax.random.split(key, 4)

    n_inputs = 16      # even number of waveguide ports
    n_cols = 64        # columns of x_matrix (wrapper pads to 128 lanes)

    n_mmi = n_inputs // 2
    mmi_i_losses = 0.8 + 0.2 * jax.random.uniform(k1, (n_mmi,), dtype=jnp.float32)
    mmi_imbalances = 0.9 + 0.2 * jax.random.uniform(k2, (n_mmi,), dtype=jnp.float32)

    tau_tf, kappa_tf = build_mmi_coefficients(n_inputs, mmi_i_losses, mmi_imbalances)

    # Complex input matrix, as separate real/imag f32 planes
    # (Mosaic has no native complex dtype).
    x_real = jax.random.normal(k3, (n_inputs, n_cols), dtype=jnp.float32)
    x_imag = jax.random.normal(k4, (n_inputs, n_cols), dtype=jnp.float32)

    out_r, out_i = mmi_layer_matrix_even_forward(tau_tf, kappa_tf, x_real, x_imag)
    out_r = jax.block_until_ready(out_r)
    out_i = jax.block_until_ready(out_i)

    # Reference: dense complex matmul (same semantics as torch.mm in the module).
    m_c = build_mmi_dense_reference(n_inputs, tau_tf, kappa_tf)
    x_c = x_real.astype(jnp.complex64) + 1j * x_imag.astype(jnp.complex64)
    ref = m_c @ x_c

    np.testing.assert_allclose(np.asarray(out_r), np.asarray(ref.real),
                               rtol=1e-5, atol=1e-5)
    np.testing.assert_allclose(np.asarray(out_i), np.asarray(ref.imag),
                               rtol=1e-5, atol=1e-5)

    print("KERNEL_OK")
</pallas_src>

<mosaic_0001>
module attributes {stable_mosaic.version = 11 : i64} {
  func.func @_mmi_even_kernel(%arg0: i32, %arg1: i32, %arg2: i32, %arg3: memref<8x1xf32, #tpu.memory_space<vmem>>, %arg4: memref<8x1xf32, #tpu.memory_space<vmem>>, %arg5: memref<8x128xf32, #tpu.memory_space<vmem>>, %arg6: memref<8x128xf32, #tpu.memory_space<vmem>>, %arg7: memref<8x128xf32, #tpu.memory_space<vmem>>, %arg8: memref<8x128xf32, #tpu.memory_space<vmem>>, %arg9: memref<8x128xf32, #tpu.memory_space<vmem>>, %arg10: memref<8x128xf32, #tpu.memory_space<vmem>>) attributes {dimension_semantics = [#tpu.dimension_semantics<parallel>, #tpu.dimension_semantics<parallel>, #tpu.dimension_semantics<arbitrary>], iteration_bounds = array<i64: 1, 1, 2>, scalar_prefetch = 0 : i64, scratch_operands = 0 : i64, tpu.core_type = #tpu.core_type<tc>, window_params = [{transform_indices = @transform_0, window_bounds = array<i64: 8, 1>}, {transform_indices = @transform_1, window_bounds = array<i64: 8, 1>}, {transform_indices = @transform_2, window_bounds = array<i64: 8, 128>}, {transform_indices = @transform_3, window_bounds = array<i64: 8, 128>}, {transform_indices = @transform_4, window_bounds = array<i64: 8, 128>}, {transform_indices = @transform_5, window_bounds = array<i64: 8, 128>}, {transform_indices = @transform_6, window_bounds = array<i64: 8, 128>}, {transform_indices = @transform_7, window_bounds = array<i64: 8, 128>}]} {
    %c0 = arith.constant 0 : index
    %c0_0 = arith.constant 0 : index
    %0 = vector.load %arg3[%c0, %c0_0] : memref<8x1xf32, #tpu.memory_space<vmem>>, vector<8x1xf32>
    %c0_1 = arith.constant 0 : index
    %c0_2 = arith.constant 0 : index
    %1 = vector.load %arg4[%c0_1, %c0_2] : memref<8x1xf32, #tpu.memory_space<vmem>>, vector<8x1xf32>
    %c0_i32 = arith.constant 0 : i32
    %2 = arith.cmpi eq, %arg2, %c0_i32 : i32
    %3 = arith.extui %2 : i1 to i32
    %c0_i32_3 = arith.constant 0 : i32
    %4 = arith.cmpi ne, %3, %c0_i32_3 : i32
    scf.if %4 {
      %c0_5 = arith.constant 0 : index
      %c0_6 = arith.constant 0 : index
      %8 = vector.load %arg5[%c0_5, %c0_6] : memref<8x128xf32, #tpu.memory_space<vmem>>, vector<8x128xf32>
      %9 = vector.broadcast %0 : vector<8x1xf32> to vector<8x128xf32>
      %10 = arith.mulf %9, %8 : vector<8x128xf32>
      %c0_7 = arith.constant 0 : index
      %c0_8 = arith.constant 0 : index
      %11 = vector.load %arg8[%c0_7, %c0_8] : memref<8x128xf32, #tpu.memory_space<vmem>>, vector<8x128xf32>
      %12 = vector.broadcast %1 : vector<8x1xf32> to vector<8x128xf32>
      %13 = arith.mulf %12, %11 : vector<8x128xf32>
      %14 = arith.subf %10, %13 : vector<8x128xf32>
      %c0_9 = arith.constant 0 : index
      %c0_10 = arith.constant 0 : index
      %15 = vector.load %arg9[%c0_9, %c0_10] : memref<8x128xf32, #tpu.memory_space<vmem>>, vector<8x128xf32>
      tpu.vector_store %arg9[%c0_9, %c0_10], %14 {strides = array<i32>} : memref<8x128xf32, #tpu.memory_space<vmem>>, vector<8x128xf32>,
      %c0_11 = arith.constant 0 : index
      %c0_12 = arith.constant 0 : index
      %16 = vector.load %arg6[%c0_11, %c0_12] : memref<8x128xf32, #tpu.memory_space<vmem>>, vector<8x128xf32>
      %17 = vector.broadcast %0 : vector<8x1xf32> to vector<8x128xf32>
      %18 = arith.mulf %17, %16 : vector<8x128xf32>
      %c0_13 = arith.constant 0 : index
      %c0_14 = arith.constant 0 : index
      %19 = vector.load %arg7[%c0_13, %c0_14] : memref<8x128xf32, #tpu.memory_space<vmem>>, vector<8x128xf32>
      %20 = vector.broadcast %1 : vector<8x1xf32> to vector<8x128xf32>
      %21 = arith.mulf %20, %19 : vector<8x128xf32>
      %22 = arith.addf %18, %21 : vector<8x128xf32>
      %c0_15 = arith.constant 0 : index
      %c0_16 = arith.constant 0 : index
      %23 = vector.load %arg10[%c0_15, %c0_16] : memref<8x128xf32, #tpu.memory_space<vmem>>, vector<8x128xf32>
      tpu.vector_store %arg10[%c0_15, %c0_16], %22 {strides = array<i32>} : memref<8x128xf32, #tpu.memory_space<vmem>>, vector<8x128xf32>,
    } else {
    }
    %c1_i32 = arith.constant 1 : i32
    %5 = arith.cmpi eq, %arg2, %c1_i32 : i32
    %6 = arith.extui %5 : i1 to i32
    %c0_i32_4 = arith.constant 0 : i32
    %7 = arith.cmpi ne, %6, %c0_i32_4 : i32
    scf.if %7 {
      %c0_5 = arith.constant 0 : index
      %c0_6 = arith.constant 0 : index
      %8 = vector.load %arg7[%c0_5, %c0_6] : memref<8x128xf32, #tpu.memory_space<vmem>>, vector<8x128xf32>
      %9 = vector.broadcast %0 : vector<8x1xf32> to vector<8x128xf32>
      %10 = arith.mulf %9, %8 : vector<8x128xf32>
      %c0_7 = arith.constant 0 : index
      %c0_8 = arith.constant 0 : index
      %11 = vector.load %arg6[%c0_7, %c0_8] : memref<8x128xf32, #tpu.memory_space<vmem>>, vector<8x128xf32>
      %12 = vector.broadcast %1 : vector<8x1xf32> to vector<8x128xf32>
      %13 = arith.mulf %12, %11 : vector<8x128xf32>
      %14 = arith.subf %10, %13 : vector<8x128xf32>
      %c0_9 = arith.constant 0 : index
      %c0_10 = arith.constant 0 : index
      %15 = vector.load %arg9[%c0_9, %c0_10] : memref<8x128xf32, #tpu.memory_space<vmem>>, vector<8x128xf32>
      tpu.vector_store %arg9[%c0_9, %c0_10], %14 {strides = array<i32>} : memref<8x128xf32, #tpu.memory_space<vmem>>, vector<8x128xf32>,
      %c0_11 = arith.constant 0 : index
      %c0_12 = arith.constant 0 : index
      %16 = vector.load %arg8[%c0_11, %c0_12] : memref<8x128xf32, #tpu.memory_space<vmem>>, vector<8x128xf32>
      %17 = vector.broadcast %0 : vector<8x1xf32> to vector<8x128xf32>
      %18 = arith.mulf %17, %16 : vector<8x128xf32>
      %c0_13 = arith.constant 0 : index
      %c0_14 = arith.constant 0 : index
      %19 = vector.load %arg5[%c0_13, %c0_14] : memref<8x128xf32, #tpu.memory_space<vmem>>, vector<8x128xf32>
      %20 = vector.broadcast %1 : vector<8x1xf32> to vector<8x128xf32>
      %21 = arith.mulf %20, %19 : vector<8x128xf32>
      %22 = arith.addf %18, %21 : vector<8x128xf32>
      %c0_15 = arith.constant 0 : index
      %c0_16 = arith.constant 0 : index
      %23 = vector.load %arg10[%c0_15, %c0_16] : memref<8x128xf32, #tpu.memory_space<vmem>>, vector<8x128xf32>
      tpu.vector_store %arg10[%c0_15, %c0_16], %22 {strides = array<i32>} : memref<8x128xf32, #tpu.memory_space<vmem>>, vector<8x128xf32>,
    } else {
    }
    return
  }
  func.func @transform_0(%arg0: i32, %arg1: i32, %arg2: i32) -> (i32, i32) {
    %c0_i32 = arith.constant 0 : i32
    %c0_i32_0 = arith.constant 0 : i32
    return %arg0, %c0_i32 : i32, i32
  }
  func.func @transform_1(%arg0: i32, %arg1: i32, %arg2: i32) -> (i32, i32) {
    %c0_i32 = arith.constant 0 : i32
    %c0_i32_0 = arith.constant 0 : i32
    return %arg0, %c0_i32 : i32, i32
  }
  func.func @transform_2(%arg0: i32, %arg1: i32, %arg2: i32) -> (i32, i32) {
    %c0_i32 = arith.constant 0 : i32
    return %arg0, %arg1 : i32, i32
  }
  func.func @transform_3(%arg0: i32, %arg1: i32, %arg2: i32) -> (i32, i32) {
    %c0_i32 = arith.constant 0 : i32
    return %arg0, %arg1 : i32, i32
  }
  func.func @transform_4(%arg0: i32, %arg1: i32, %arg2: i32) -> (i32, i32) {
    %c1_i32 = arith.constant 1 : i32
    %0 = arith.addi %c1_i32, %arg1 : i32
    %c0_i32 = arith.constant 0 : i32
    return %arg0, %0 : i32, i32
  }
  func.func @transform_5(%arg0: i32, %arg1: i32, %arg2: i32) -> (i32, i32) {
    %c1_i32 = arith.constant 1 : i32
    %0 = arith.addi %c1_i32, %arg1 : i32
    %c0_i32 = arith.constant 0 : i32
    return %arg0, %0 : i32, i32
  }
  func.func @transform_6(%arg0: i32, %arg1: i32, %arg2: i32) -> (i32, i32) {
    %c1_i32 = arith.constant 1 : i32
    %0 = arith.muli %arg2, %c1_i32 : i32
    %1 = arith.addi %0, %arg1 : i32
    %c0_i32 = arith.constant 0 : i32
    return %arg0, %1 : i32, i32
  }
  func.func @transform_7(%arg0: i32, %arg1: i32, %arg2: i32) -> (i32, i32) {
    %c1_i32 = arith.constant 1 : i32
    %0 = arith.muli %arg2, %c1_i32 : i32
    %1 = arith.addi %0, %arg1 : i32
    %c0_i32 = arith.constant 0 : i32
    return %arg0, %1 : i32, i32
  }
}

</mosaic_0001>

<bundles_post_ra>
// kernel: tpu_custom_call.1
= control target key start
LH: loop header
LB: loop body
LE: loop exit
PB: predicated region body
PF: predicated region fallthrough
CT: control target
= control target key end

     0   :  { %s1283_s0 = inlined_call_operand.vmem [shape: f32[8,1], index: 0, kind: input, shape index: {}]   ;;  %s1284_s1 = inlined_call_operand.vmem [shape: f32[8,1], index: 1, kind: input, shape index: {}]   ;;  %s1285_s2 = inlined_call_operand.vmem [shape: f32[8,256], index: 2, kind: input, shape index: {}]   ;;  %s1286_s3 = inlined_call_operand.hbm [shape: f32[8,256], index: 3, kind: input, shape index: {}]   ;;  %s1287_s4 = inlined_call_operand.hbm [shape: f32[8,256], index: 4, kind: input, shape index: {}]   ;;  %s1288_s5 = inlined_call_operand.hbm [shape: f32[8,256], index: 5, kind: input, shape index: {}]   ;;  %s1289_s6 = inlined_call_operand.hbm [shape: f32[8,256], index: 6, kind: output, shape index: {0}]   ;;  %s1290_s7 = inlined_call_operand.hbm [shape: f32[8,256], index: 7, kind: output, shape index: {1}]  }
   0x1   :  { %1293 = sst [smem:[#allocation17_spill]] %s1287_s4 }
   0x2   :  { %13 = vsyncpa [#allocation3], 0 }
   0x3   :  { %14 = vsyncpa [#allocation6], 0 }
   0x4   :  { %15 = vsyncpa [#allocation4], 0 }
   0x5   :  { %17 = vsyncpa [#allocation4 + $0x1], 0 }
   0x6   :  { %18 = vsyncpa [#allocation10], 0 }
   0x7   :  { %20 = vsyncpa [#allocation10 + $0x1], 0  ;;  %s1108_s24 = smov 0   ;;  %s1110_s25 = smov 0  }
   0x8   :  { %s1112_s26 = smov 0   ;;  %s1114_s27 = smov 0  }
   0x9   :  { %s1116_s28 = smov 0   ;;  %s1118_s29 = smov 0  }
   0xa LB: > { %1294 = sst [smem:[#allocation15_spill]] %s1057_s28  ;;  %s735_s30 = sadd.s32 4294967295, %s1061_s29   ;;  %s1061_s29 = sphi %s1118_s29, %s26_s29   ;;  %s1057_s28 = sphi %s1116_s28, %s1303_s28   ;;  %s1053_s27 = sphi %s1114_s27, %s1302_s27   ;;  %s1049_s26 = sphi %s1112_s26, %s1306_s26   ;;  %s1045_s25 = sphi %s1110_s25, %s1305_s25   ;;  %s1041_s24 = sphi %s1108_s24, %s1304_s24  }
   0xb   : > { %s736_s8 = sadd.s32 4294967294, %s1061_s29   ;;  %s38_s9 = sadd.s32 1, %s1057_s28 }
   0xc   : > { %s224_s10 = sadd.s32 1, %s1049_s26  ;;  %p39_p0 = scmp.ge.s32.totalorder %s38_s9, 2 }
   0xd   : > { %p234_p1 = scmp.ne.s32.totalorder %s1049_s26, %s1045_s25  ;;  %p235_p2 = scmp.eq.s32.totalorder %s735_s30, 1 }
   0xe   : > { %p240_p3 = scmp.ne.s32.totalorder %s1045_s25, %s1041_s24  ;;  %s1308_s9 = smov (%p39_p0, %s38_s9), 0 }
   0xf   : > { %1295 = sst [smem:[#allocation16_spill]] %s1308_s9  ;;  %p1148_p4 = por %p235_p2, %p234_p1 }
  0x10   : > { %p241_p5 = scmp.eq.s32.totalorder %s736_s8, 1  ;;  %s220_s12 = ssub.s32 %s1057_s28, %s1308_s9 }
  0x11   : > { %p737_p6 = scmp.ge.s32.totalorder %s1061_s29, 1  ;;  %p222_p7 = scmp.eq.s32.totalorder %s220_s12, 0 }
  0x12   : > { %p1155_p8 = por %p241_p5, %p240_p3  ;;  %p278_p9 = scmp.lt.s32.totalorder %s1061_s29, 3 }
  0x13   : > { %s1161_s14 = scalar_select %p222_p7, %s1049_s26, %s224_s10  }
  0x14   : > { %p1163_p10 = pnand %p737_p6, %p278_p9  ;;  %p1167_p11 = scmp.eq.s32.totalorder %s735_s30, 0 }
  0x15   : > { %s1300_s4 = sld [smem:[#allocation17_spill]]  ;;  %s1063_s21 = smov [#allocation5]  }
  0x16   : > { %p774_p12 = pneg %p1163_p10  ;;  %s338_s22 = sshll.u32 %s1063_s21, 4  ;;  %s339_s22 = int_to_ptr.vmem [resolvable:$true] %s338_s22 }
  0x17   : > { %s319_s10 = sshll.u32 %s1286_s3, 4  ;;  %s1064_s12 = smov [#allocation2]   ;;  %s320_s10 = int_to_ptr.hbm [resolvable:$true] %s319_s10 }
  0x18   : > { %p1178_p13 = pnand %p1167_p11, %p774_p12  ;;  %s321_s17 = sshll.u32 %s1064_s12, 4  ;;  %s322_s17 = int_to_ptr.vmem [resolvable:$true] %s321_s17 }
  0x19   : > { %s601_s21 = scalar_lea.hbm %s1288_s5, 8  ;;  %s1065_s9 = smov [#allocation7]  }
  0x1a   : > { %777 = dma.hbm_to_vmem [thread:$0]  (!%p1178_p13), %s320_s10, 128, %s322_s17, [#allocation3]  }
  0x1b   : > { %s596_s19 = scalar_lea.hbm %s1300_s4, 8  ;;  %s353_s4 = sshll.u32 %s601_s21, 4  ;;  %s354_s4 = int_to_ptr.hbm [resolvable:$true] %s353_s4 }
  0x1c   : > { %s336_s20 = sshll.u32 %s596_s19, 4  ;;  %s355_s28 = sshll.u32 %s1065_s9, 4  ;;  %s337_s20 = int_to_ptr.hbm [resolvable:$true] %s336_s20  ;;  %s356_s28 = int_to_ptr.vmem [resolvable:$true] %s355_s28 }
  0x1d   : > { %780 = dma.hbm_to_vmem [thread:$0]  (!%p1178_p13), %s337_s20, 128, %s339_s22, [#allocation6]  }
  0x1e   : > { %783 = dma.hbm_to_vmem [thread:$0]  (!%p1178_p13), %s354_s4, 128, %s356_s28, [#allocation6]  }
  0x1f   : > { %368 = sbr.rel (%p1163_p10) target bundleno = 345 (0x159), region = 44 }
  0x24   : > { %1024 = dma.done.wait (%p1167_p11), [#allocation3], 128  }
  0x25   : > { %1026 = vsyncadd (%p1167_p11), [#allocation3], 4294967168 }
  0x26   : > { %1028 = dma.done.wait (%p1167_p11), [#allocation6], 256  }
  0x27   : > { %1030 = vsyncadd (%p1167_p11), [#allocation6], 4294967040  ;;  %s1205_s9 = sand.u32 1, %s1045_s25   ;;  %v447_v0 = vld [vmem:[%s1283_s0] sm:$0xff]  ;;  %p750_p0 = scmp.ne.s32.totalorder %s1053_s27, 0 }
  0x28   : > { %s748_s4 = sshll.u32 %s1205_s9, 3  ;;  %v448_v1 = vld [vmem:[%s1284_s1] sm:$0xff] }
  0x29   : > { %s1214_s23 = scalar_lea.vmem [#allocation8], %s748_s4  ;;  %s1216_s30 = scalar_lea.vmem [#allocation9], %s748_s4 }
  0x2a   : > { %452 = sbr.rel (%p750_p0) target bundleno = 178 (0xb2), region = 60 }
  0x2f   : > { %v1066_v2 = vmov 0   ;;  %v469_v4 = vld [vmem:[#allocation2] sm:$0xff]  ;;  %v460_v6 = vld [vmem:[#allocation7] sm:$0xff]  ;;  %v471_v7 = vld [vmem:[#allocation5] sm:$0xff] }
  0x30   : > { %851 = vset.pattern.permute.xlu0 %v1066_v2  ;;  %v453_v5 = vld [vmem:[%s1285_s2] sm:$0xff] }
  0x31   : > { %456 = vperm.xlu0 %851, %v447_v0  }
  0x39   : > { %463 = vperm.xlu0 %851, %v448_v1  }
  0xa3   : > { %v457_v3 = vpop.permute.xlu0 %456 }
  0xa4   : > { %v459_v9 = vmul.f32 %v457_v3, %v453_v5  ;;  %v470_v10 = vmul.f32 %v469_v4, %v457_v3 }
  0xab   : > { %v464_v8 = vpop.permute.xlu0 %463 }
  0xac   : > { %v466_v11 = vmul.f32 %v464_v8, %v460_v6  ;;  %v472_v12 = vmul.f32 %v471_v7, %v464_v8 }
  0xae   : > { %v467_v13 = vsub.f32 %v459_v9, %v466_v11  ;;  %v473_v14 = vadd.f32 %v472_v12, %v470_v10 }
  0xb0   : > { %468 = vst [vmem:[%s1214_s23] sm:$0xff] %v467_v13 }
  0xb1   : > { %474 = vst [vmem:[%s1216_s30] sm:$0xff] %v473_v14 }
  0xb2 PF: > { %p751_p1 = scmp.ne.s32.totalorder %s1053_s27, 1 }
  0xb4   : > { %478 = sbr.rel (%p751_p1) target bundleno = 316 (0x13c), region = 64 }
  0xb9   : > { %v1067_v15 = vmov 0   ;;  %v495_v17 = vld [vmem:[#allocation7] sm:$0xff]  ;;  %v479_v18 = vld [vmem:[#allocation5] sm:$0xff]  ;;  %v486_v19 = vld [vmem:[#allocation2] sm:$0xff] }
  0xba   : > { %852 = vset.pattern.permute.xlu0 %v1067_v15  ;;  %v497_v20 = vld [vmem:[%s1285_s2] sm:$0xff] }
  0xbb   : > { %482 = vperm.xlu0 %852, %v447_v0  }
  0xc3   : > { %489 = vperm.xlu0 %852, %v448_v1  }
 0x12d   : > { %v483_v16 = vpop.permute.xlu0 %482 }
 0x12e   : > { %v485_v22 = vmul.f32 %v483_v16, %v479_v18  ;;  %v496_v23 = vmul.f32 %v495_v17, %v483_v16 }
 0x135   : > { %v490_v21 = vpop.permute.xlu0 %489 }
 0x136   : > { %v492_v24 = vmul.f32 %v490_v21, %v486_v19  ;;  %v498_v25 = vmul.f32 %v497_v20, %v490_v21 }
 0x138   : > { %v493_v26 = vsub.f32 %v485_v22, %v492_v24  ;;  %v499_v27 = vadd.f32 %v498_v25, %v496_v23 }
 0x13a   : > { %494 = vst [vmem:[%s1214_s23] sm:$0xff] %v493_v26 }
 0x13b   : > { %500 = vst [vmem:[%s1216_s30] sm:$0xff] %v499_v27 }
 0x13c PF: > { %s754_s17 = sshll.u32 %s1053_s27, 3  ;;  %s522_s4 = sshll.u32 %s1214_s23, 4  ;;  %s523_s4 = int_to_ptr.vmem [resolvable:$true] %s522_s4 }
 0x13d   : > { %s520_s21 = scalar_lea.hbm %s1289_s6, %s754_s17  ;;  %s502_s15 = scalar_lea.sflag [#allocation4], %s1205_s9 }
 0x13e   : > { %s524_s28 = sshll.u32 %s520_s21, 4  ;;  %s963_s27 = scalar_lea.hbm %s1289_s6, 16  ;;  %s525_s28 = int_to_ptr.hbm [resolvable:$true] %s524_s28 }
 0x13f   : > { %s957_s20 = sshra.s32 %s525_s28, 4  ;;  %s958_s20 = int_to_ptr.hbm [resolvable:$true] %s957_s20 }
 0x140   : > { %s959_s22 = scalar_lea.hbm %s958_s20, 8  ;;  %p964_p6 = scmp.lt.s32.totalorder %s958_s20, %s1289_s6 }
 0x141   : > { %p960_p2 = scmp.ne.s32.totalorder %s958_s20, %s959_s22  ;;  %p965_p7 = scmp.lt.s32.totalorder %s963_s27, %s959_s22 }
 0x143   : > { %p961_p3 = pnand %p960_p2, %p1148_p4  ;;  %p966_p9 = por %p965_p7, %p964_p6 }
 0x145   : > { %p962_p5 = pneg %p961_p3 }
 0x147   : > { %p967_p10 = pnand %p966_p9, %p962_p5 }
 0x149   : > { %970 = shalt.err (!%p967_p10)
}
 0x14a   : > { %770 = dma.vmem_to_hbm [thread:$0]  (%p1148_p4), %s523_s4, 128, %s525_s28, %s502_s15  }
 0x14b   : > { %s537_s19 = scalar_lea.hbm %s1290_s7, %s754_s17  ;;  %s539_s21 = sshll.u32 %s1216_s30, 4  ;;  %s540_s21 = int_to_ptr.vmem [resolvable:$true] %s539_s21 }
 0x14c   : > { %s541_s16 = sshll.u32 %s537_s19, 4  ;;  %s507_s8 = scalar_lea.sflag [#allocation10], %s1205_s9  ;;  %s542_s16 = int_to_ptr.hbm [resolvable:$true] %s541_s16 }
 0x14d   : > { %s985_s20 = sshra.s32 %s542_s16, 4  ;;  %s991_s4 = scalar_lea.hbm %s1290_s7, 16  ;;  %s986_s20 = int_to_ptr.hbm [resolvable:$true] %s985_s20 }
 0x14e   : > { %s987_s22 = scalar_lea.hbm %s986_s20, 8  ;;  %p992_p0 = scmp.lt.s32.totalorder %s986_s20, %s1290_s7 }
 0x14f   : > { %p988_p11 = scmp.ne.s32.totalorder %s986_s20, %s987_s22  ;;  %p993_p1 = scmp.lt.s32.totalorder %s991_s4, %s987_s22 }
 0x151   : > { %p989_p12 = pnand %p988_p11, %p1148_p4  ;;  %p994_p2 = por %p993_p1, %p992_p0 }
 0x153   : > { %p990_p13 = pneg %p989_p12 }
 0x155   : > { %p995_p3 = pnand %p994_p2, %p990_p13 }
 0x157   : > { %998 = shalt.err (!%p995_p3)
}
 0x158   : > { %771 = dma.vmem_to_hbm [thread:$0]  (%p1148_p4), %s540_s21, 128, %s542_s16, %s507_s8  }
 0x159 PF: > { %p797_p5 = scmp.ge.s32.totalorder %s1061_s29, 2  ;;  %s553_s9 = sand.u32 1, %s1041_s24  }
 0x15a   : > { %s554_s30 = scalar_lea.sflag [#allocation4], %s553_s9 }
 0x15b   : > { %p785_p6 = pnand %p797_p5, %p1155_p8 }
 0x15d   : > { %p786_p7 = pneg %p785_p6 }
 0x15f   : > { %1032 = dma.done.wait (%p786_p7), %s554_s30, 128  }
 0x160   : > { %1034 = vsyncadd (%p786_p7), %s554_s30, 4294967168  ;;  %s564_s17 = scalar_lea.sflag [#allocation10], %s553_s9 }
 0x161   : > { %1036 = dma.done.wait (%p786_p7), %s564_s17, 128  }
 0x162   : > { %1038 = vsyncadd (%p786_p7), %s564_s17, 4294967168  ;;  %s26_s29 = sadd.s32 1, %s1061_s29   ;;  %s1302_s27 = sld [smem:[#allocation15_spill]] }
 0x163   : > { %p23_p9 = scmp.ge.s32.totalorder %s26_s29, 4   ;;  %s1303_s28 = sld [smem:[#allocation16_spill]] }
 0x164   : > { %s1304_s24 = smov %s1045_s25  ;;  %s1305_s25 = smov %s1049_s26 }
 0x165   : > { %s1306_s26 = smov %s1161_s14  ;;  %25 = sbr.rel (!%p23_p9) target bundleno = 10 (0xa), region = 126 }
 0x16a   :  { %570 = vsyncpa [#allocation3], 1 }
 0x16b   :  { %572 = vsyncpa [#allocation3 + $0x1], 1 }
 0x16c   :  { %573 = vsyncpa [#allocation6], 1 }
 0x16d   :  { %574 = vsyncpa [#allocation4], 1 }
 0x16e   :  { %576 = vsyncpa [#allocation4 + $0x1], 1 }
 0x16f   :  { %577 = vsyncpa [#allocation10], 1 }
 0x170   :  { %579 = vsyncpa [#allocation10 + $0x1], 1 }

</bundles_post_ra>
